<compile_context>
chip_gen: v7x
topology: tpu7x:2x2x1
jax: 0.10.0
libtpu: 0.0.40
codegen_flags: <defaults>
</compile_context>

<pallas_src>
import jax
import jax.numpy as jnp
from jax.experimental import pallas as pl
from jax.experimental.pallas import tpu as pltpu


# ----------------------------------------------------------------------------
# Fused per-branch kernel: spatial sum -> single folded Linear
# ----------------------------------------------------------------------------
def _vicreg_branch_kernel(x_ref, w_ref, b_ref, out_ref):
    """One branch per grid step (branch axis marked 'parallel').

    x_ref : [B, S, C]  channels-last, zero-padded, f32
    w_ref : [C, E]     bf16 folded weight  ((Wbb @ Wexp) / S_actual)
    b_ref : [1, E]     f32 folded bias     (bbb @ Wexp + bexp)
    out   : [B, E]
    """
    pooled_sum = jnp.sum(x_ref[...], axis=1)               # f32 [B, C], sublane reduce
    emb = jnp.dot(pooled_sum.astype(jnp.bfloat16), w_ref[...],
                  preferred_element_type=jnp.float32) + b_ref[...]
    out_ref[...] = emb.astype(out_ref.dtype)                # lane-dense [B, E] store


def vicreg_forward(params, video, audio):
    """Fused VICReg forward. Returns (video_emb, audio_emb), each [B, E]."""
    B, Cv = video.shape[0], video.shape[1]
    Ca = audio.shape[1]
    Sv = video.shape[2] * video.shape[3]
    Sa = audio.shape[2]

    wv_bb, bv_bb = params["video_bb"]
    wa_bb, ba_bb = params["audio_bb"]
    wv_exp, bv_exp = params["video_exp"]
    wa_exp, ba_exp = params["audio_exp"]
    E = wv_exp.shape[1]

    # ---- fold backbone Linear + Expander Linear into one matmul per branch
    #      (valid: no BN/ReLU in between for scalar exp_dims); fold the 1/S
    #      mean factor into the weight so the kernel only needs a sum. --------
    Wv = (wv_bb @ wv_exp) / jnp.float32(Sv)                 # [Cv, E]
    Wa = (wa_bb @ wa_exp) / jnp.float32(Sa)                 # [Ca, E]
    bv = bv_bb @ wv_exp + bv_exp                            # [1, E]
    ba = ba_bb @ wa_exp + ba_exp                            # [1, E]

    # ---- channels-last inputs, zero-padded to a common [B, S_max, C_max] ----
    C_max = max(Cv, Ca)
    S_max = max(Sv, Sa)
    v3 = jnp.transpose(video.reshape(B, Cv, Sv), (0, 2, 1))        # [B, Sv, Cv]
    a3 = jnp.transpose(audio, (0, 2, 1))                            # [B, Sa, Ca]
    v3 = jnp.pad(v3, ((0, 0), (0, S_max - Sv), (0, C_max - Cv)))
    a3 = jnp.pad(a3, ((0, 0), (0, S_max - Sa), (0, C_max - Ca)))
    x = jnp.stack([v3, a3], axis=0)                                 # [2, B, S_max, C_max]

    W = jnp.stack([jnp.pad(Wv, ((0, C_max - Cv), (0, 0))),
                   jnp.pad(Wa, ((0, C_max - Ca), (0, 0)))], axis=0)
    W = W.astype(jnp.bfloat16)                                      # [2, C_max, E] bf16
    b = jnp.stack([bv, ba], axis=0).astype(jnp.float32)             # [2, 1, E] f32

    out = pl.pallas_call(
        _vicreg_branch_kernel,
        out_shape=jax.ShapeDtypeStruct((2, B, E), video.dtype),
        grid=(2,),                                                  # branch axis
        in_specs=[
            pl.BlockSpec((None, B, S_max, C_max), lambda g: (g, 0, 0, 0)),
            pl.BlockSpec((None, C_max, E), lambda g: (g, 0, 0)),
            pl.BlockSpec((None, 1, E), lambda g: (g, 0, 0)),
        ],
        out_specs=pl.BlockSpec((None, B, E), lambda g: (g, 0, 0)),
        compiler_params=pltpu.CompilerParams(
            dimension_semantics=("parallel",),       # v7x: one branch per TC
            vmem_limit_bytes=32 * 1024 * 1024,
        ),
    )(x, W, b)

    # PyTorch's `.squeeze()` on the backbone output is a no-op for [B, F].
    return out[0], out[1]


# ----------------------------------------------------------------------------
# Synthetic backbone + Expander parameters (deterministic, built in-script)
# ----------------------------------------------------------------------------
def _init_linear(key, fan_in, fan_out):
    # PyTorch-Linear-like uniform init; bias stored as a [1, fan_out] row.
    kw, kb = jax.random.split(key)
    bound = 1.0 / jnp.sqrt(jnp.float32(fan_in))
    w = jax.random.uniform(kw, (fan_in, fan_out), jnp.float32, -bound, bound)
    b = jax.random.uniform(kb, (1, fan_out), jnp.float32, -bound, bound)
    return w, b


def make_vicreg_params(key, video_c, audio_c, feat_dim, exp_dim):
    k1, k2, k3, k4 = jax.random.split(key, 4)
    return {
        "video_bb": _init_linear(k1, video_c, feat_dim),    # video_model fc
        "audio_bb": _init_linear(k2, audio_c, feat_dim),    # audio_model fc
        "video_exp": _init_linear(k3, feat_dim, exp_dim),   # Expander (one Linear)
        "audio_exp": _init_linear(k4, feat_dim, exp_dim),   # Expander (one Linear)
    }


# ----------------------------------------------------------------------------
if __name__ == "__main__":
    B = 2
    VIDEO_C, H, W = 4, 16, 16     # video: NCHW
    AUDIO_C, L = 8, 64            # audio: NCL
    FEAT_DIM = 128                # backbone out_dim (lane-dense)
    EXP_DIM = 128                 # exp_dims (scalar -> Expander = one Linear)

    key = jax.random.PRNGKey(0)
    k_params, k_vid, k_aud = jax.random.split(key, 3)

    params = make_vicreg_params(k_params, VIDEO_C, AUDIO_C, FEAT_DIM, EXP_DIM)
    video = jax.random.normal(k_vid, (B, VIDEO_C, H, W), jnp.float32)
    audio = jax.random.normal(k_aud, (B, AUDIO_C, L), jnp.float32)

    video_emb, audio_emb = jax.jit(vicreg_forward)(params, video, audio)
    jax.block_until_ready((video_emb, audio_emb))

    assert video_emb.shape == (B, EXP_DIM), video_emb.shape
    assert audio_emb.shape == (B, EXP_DIM), audio_emb.shape

    # Pure-JAX f32 reference, same op order as the PyTorch module:
    # mean-pool -> backbone Linear -> Expander Linear (unfolded, unscaled).
    def ref_forward(params, video, audio):
        def bb(x, w, b):
            pooled = x.reshape(x.shape[0], x.shape[1], -1).mean(-1)
            return pooled @ w + b
        v = bb(video, *params["video_bb"])
        v = v @ params["video_exp"][0] + params["video_exp"][1]
        a = bb(audio, *params["audio_bb"])
        a = a @ params["audio_exp"][0] + params["audio_exp"][1]
        return v, a

    v_ref, a_ref = ref_forward(params, video, audio)
    # bf16 MXU operands (f32 accumulation) -> loosened tolerance per review.
    assert jnp.allclose(video_emb, v_ref, atol=2e-2, rtol=2e-2), (
        jnp.max(jnp.abs(video_emb - v_ref)))
    assert jnp.allclose(audio_emb, a_ref, atol=2e-2, rtol=2e-2), (
        jnp.max(jnp.abs(audio_emb - a_ref)))

    print("KERNEL_OK")
</pallas_src>

<mosaic_0001>
module attributes {stable_mosaic.version = 11 : i64} {
  func.func @_vicreg_branch_kernel(%arg0: i32, %arg1: memref<1x2x256x8xf32, #tpu.memory_space<vmem>>, %arg2: memref<1x8x128xbf16, #tpu.memory_space<vmem>>, %arg3: memref<1x1x128xf32, #tpu.memory_space<vmem>>, %arg4: memref<1x2x128xf32, #tpu.memory_space<vmem>>) attributes {dimension_semantics = [#tpu.dimension_semantics<parallel>], iteration_bounds = array<i64: 2>, scalar_prefetch = 0 : i64, scratch_operands = 0 : i64, tpu.core_type = #tpu.core_type<tc>, window_params = [{transform_indices = @transform_0, window_bounds = array<i64: 1, 2, 256, 8>}, {transform_indices = @transform_1, window_bounds = array<i64: 1, 8, 128>}, {transform_indices = @transform_2, window_bounds = array<i64: 1, 1, 128>}, {transform_indices = @transform_3, window_bounds = array<i64: 1, 2, 128>}]} {
    %c0 = arith.constant 0 : index
    %c0_0 = arith.constant 0 : index
    %c0_1 = arith.constant 0 : index
    %c0_2 = arith.constant 0 : index
    %0 = vector.load %arg1[%c0, %c0_0, %c0_1, %c0_2] : memref<1x2x256x8xf32, #tpu.memory_space<vmem>>, vector<1x2x256x8xf32>
    %1 = vector.shape_cast %0 : vector<1x2x256x8xf32> to vector<2x256x8xf32>
    %cst = arith.constant dense<0.000000e+00> : vector<2x8xf32>
    %2 = vector.multi_reduction <add>, %1, %cst [1] : vector<2x256x8xf32> to vector<2x8xf32>
    %3 = arith.truncf %2 : vector<2x8xf32> to vector<2x8xbf16>
    %c0_3 = arith.constant 0 : index
    %c0_4 = arith.constant 0 : index
    %c0_5 = arith.constant 0 : index
    %4 = vector.load %arg2[%c0_3, %c0_4, %c0_5] : memref<1x8x128xbf16, #tpu.memory_space<vmem>>, vector<1x8x128xbf16>
    %5 = vector.shape_cast %4 : vector<1x8x128xbf16> to vector<8x128xbf16>
    %cst_6 = arith.constant dense<0.000000e+00> : vector<2x128xf32>
    %6 = tpu.matmul %3, %5, %cst_6 {dimension_numbers = #tpu.dot_dimension_numbers<[1], [0], [0], [1], [0, 0, 1, 1], [], []>} : vector<2x8xbf16>, vector<8x128xbf16>, vector<2x128xf32> -> vector<2x128xf32>
    %c0_7 = arith.constant 0 : index
    %c0_8 = arith.constant 0 : index
    %c0_9 = arith.constant 0 : index
    %7 = vector.load %arg3[%c0_7, %c0_8, %c0_9] : memref<1x1x128xf32, #tpu.memory_space<vmem>>, vector<1x1x128xf32>
    %8 = vector.shape_cast %7 : vector<1x1x128xf32> to vector<1x128xf32>
    %9 = vector.broadcast %8 : vector<1x128xf32> to vector<2x128xf32>
    %10 = arith.addf %6, %9 : vector<2x128xf32>
    %c0_10 = arith.constant 0 : index
    %c0_11 = arith.constant 0 : index
    %c0_12 = arith.constant 0 : index
    %11 = vector.load %arg4[%c0_10, %c0_11, %c0_12] : memref<1x2x128xf32, #tpu.memory_space<vmem>>, vector<1x2x128xf32>
    %12 = vector.shape_cast %11 : vector<1x2x128xf32> to vector<2x128xf32>
    %13 = vector.shape_cast %10 : vector<2x128xf32> to vector<1x2x128xf32>
    tpu.vector_store %arg4[%c0_10, %c0_11, %c0_12], %13 {strides = array<i32>} : memref<1x2x128xf32, #tpu.memory_space<vmem>>, vector<1x2x128xf32>,
    return
  }
  func.func @transform_0(%arg0: i32) -> (i32, i32, i32, i32) {
    %c0_i32 = arith.constant 0 : i32
    %c0_i32_0 = arith.constant 0 : i32
    %c0_i32_1 = arith.constant 0 : i32
    %c0_i32_2 = arith.constant 0 : i32
    return %arg0, %c0_i32, %c0_i32_0, %c0_i32_1 : i32, i32, i32, i32
  }
  func.func @transform_1(%arg0: i32) -> (i32, i32, i32) {
    %c0_i32 = arith.constant 0 : i32
    %c0_i32_0 = arith.constant 0 : i32
    %c0_i32_1 = arith.constant 0 : i32
    return %arg0, %c0_i32, %c0_i32_0 : i32, i32, i32
  }
  func.func @transform_2(%arg0: i32) -> (i32, i32, i32) {
    %c0_i32 = arith.constant 0 : i32
    %c0_i32_0 = arith.constant 0 : i32
    %c0_i32_1 = arith.constant 0 : i32
    return %arg0, %c0_i32, %c0_i32_0 : i32, i32, i32
  }
  func.func @transform_3(%arg0: i32) -> (i32, i32, i32) {
    %c0_i32 = arith.constant 0 : i32
    %c0_i32_0 = arith.constant 0 : i32
    %c0_i32_1 = arith.constant 0 : i32
    return %arg0, %c0_i32, %c0_i32_0 : i32, i32, i32
  }
}

</mosaic_0001>

<bundles_post_ra>
// kernel: vicreg_forward.1
= control target key start
LH: loop header
LB: loop body
LE: loop exit
PB: predicated region body
PF: predicated region fallthrough
CT: control target
= control target key end

     0   :  { %s605_s12 = smov 0   ;;  %s765_s0 = inlined_call_operand.vmem [shape: f32[2,2,256,8], index: 0, kind: input, shape index: {}]   ;;  %s766_s1 = inlined_call_operand.vmem [shape: bf16[2,8,128], index: 1, kind: input, shape index: {}]   ;;  %s767_s2 = inlined_call_operand.vmem [shape: f32[2,1,128], index: 2, kind: input, shape index: {}]   ;;  %s768_s3 = inlined_call_operand.vmem [shape: f32[2,2,128], index: 3, kind: output, shape index: {}]  }
   0x1 LB: > { %s543_s13 = sadd.s32 4294967295, %s581_s12   ;;  %p547_p0 = scmp.ge.s32.totalorder %s581_s12, 1  ;;  %s581_s12 = sphi %s605_s12, %s13_s12  }
   0x2   : > { %p154_p1 = scmp.lt.s32.totalorder %s581_s12, 3 }
   0x4   : > { %p155_p2 = pnand %p547_p0, %p154_p1 }
   0x5   : > { %p184_p3 = scmp.lt.s32.totalorder (!%p155_p2), %s543_s13, 1  ;;  %v583_v0 = vmov (!%p155_p2), 0.0   ;;  %vm584_vm0 = vmmov (!%p155_p2), 0   ;;  %vm424_vm1 = vcmask (!%p155_p2), 1043456   ;;  %vm265_vm2 = vcmask (!%p155_p2), 64512  }
   0x6   : > { %158 = sbr.rel (%p155_p2) target bundleno = 318 (0x13e), region = 32  ;;  %559 = vmatprep.subr.bf16.mxu0 (!%p155_p2), %v583_v0  ;;  %561 = vmatprep.mubr.msk.bf16.mxu0 (!%p155_p2), %vm584_vm0, %v583_v0  ;;  %vm418_vm3 = vcmask (!%p155_p2), 1041409  }
   0xd   : > { %s770_s13 = smov (!%p184_p3, %s543_s13), 1 }
   0xe   : > { %s556_s14 = sshll.u32 %s770_s13, 9  ;;  %s550_s15 = sshll.u32 %s770_s13, 2 }
   0xf   : > { %s620_s18 = scalar_lea.vmem %s765_s0, %s556_s14  ;;  %s192_s21 = scalar_lea.vmem %s766_s1, %s550_s15 }
  0x10   : > { %v406_v1 = vld [vmem:[%s192_s21] sm:$0xf]  ;;  %v202_v3 = vld [vmem:[%s620_s18 + $0x8] sm:$0xff]  ;;  %v203_v5 = vld [vmem:[%s620_s18 + $0x10] sm:$0xff]  ;;  %s195_s24 = scalar_lea.vmem %s767_s2, %s770_s13  ;;  %s551_s25 = sshll.u32 %s770_s13, 1 }
  0x11   : > { %v201_v2 = vld [vmem:[%s620_s18] sm:$0xff]  ;;  %v426_v4 = vsel %vm424_vm1, %v406_v1, 0  ;;  %v204_v6 = vld [vmem:[%s620_s18 + $0x18] sm:$0xff]  ;;  %v267_v8 = vsel %vm265_vm2, %v202_v3, 0.0  ;;  %v269_v11 = vsel %vm265_vm2, %v203_v5, 0.0  ;;  %v206_v13 = vld [vmem:[%s620_s18 + $0x28] sm:$0xff]  ;;  %s199_s28 = scalar_lea.vmem %s768_s3, %s551_s25 }
  0x12   : > { %v266_v7 = vsel %vm265_vm2, %v201_v2, 0.0  ;;  %560 = vmatpush3.bf16.msra.mxu0 %v426_v4  ;;  %v205_v9 = vld [vmem:[%s620_s18 + $0x20] sm:$0xff]  ;;  %v271_v12 = vsel %vm265_vm2, %v204_v6, 0.0  ;;  %v207_v16 = vld [vmem:[%s620_s18 + $0x30] sm:$0xff]  ;;  %v275_v18 = vsel %vm265_vm2, %v206_v13, 0.0  ;;  %v208_v19 = vld [vmem:[%s620_s18 + $0x38] sm:$0xff] }
  0x13   : > { %v268_v10 = vadd.f32 %v267_v8, %v266_v7  ;;  %v273_v15 = vsel %vm265_vm2, %v205_v9, 0.0  ;;  %v277_v21 = vsel %vm265_vm2, %v207_v16, 0.0  ;;  %v209_v22 = vld [vmem:[%s620_s18 + $0x40] sm:$0xff]  ;;  %v234_v25 = vld [vmem:[%s620_s18 + $0x108] sm:$0xff]  ;;  %v235_v26 = vld [vmem:[%s620_s18 + $0x110] sm:$0xff]  ;;  %v279_v27 = vsel %vm265_vm2, %v208_v19, 0.0 }
  0x14   : > { %v233_v24 = vld [vmem:[%s620_s18 + $0x100] sm:$0xff]  ;;  %v210_v28 = vld [vmem:[%s620_s18 + $0x48] sm:$0xff]  ;;  %v236_v29 = vld [vmem:[%s620_s18 + $0x118] sm:$0xff]  ;;  %v336_v32 = vsel %vm265_vm2, %v234_v25, 0.0  ;;  %v338_v33 = vsel %vm265_vm2, %v235_v26, 0.0  ;;  %v281_v35 = vsel %vm265_vm2, %v209_v22, 0.0 }
  0x15   : > { %v270_v14 = vadd.f32 %v269_v11, %v268_v10  ;;  %v335_v31 = vsel %vm265_vm2, %v233_v24, 0.0  ;;  %v237_v34 = vld [vmem:[%s620_s18 + $0x120] sm:$0xff]  ;;  %v211_v37 = vld [vmem:[%s620_s18 + $0x50] sm:$0xff]  ;;  %v340_v39 = vsel %vm265_vm2, %v236_v29, 0.0  ;;  %v238_v40 = vld [vmem:[%s620_s18 + $0x128] sm:$0xff]  ;;  %v283_v41 = vsel %vm265_vm2, %v210_v28, 0.0 }
  0x16   : > { %v337_v36 = vadd.f32 %v336_v32, %v335_v31  ;;  %v212_v43 = vld [vmem:[%s620_s18 + $0x58] sm:$0xff]  ;;  %v342_v45 = vsel %vm265_vm2, %v237_v34, 0.0  ;;  %v239_v46 = vld [vmem:[%s620_s18 + $0x130] sm:$0xff]  ;;  %v285_v47 = vsel %vm265_vm2, %v211_v37, 0.0  ;;  %v213_v49 = vld [vmem:[%s620_s18 + $0x60] sm:$0xff]  ;;  %v344_v51 = vsel %vm265_vm2, %v238_v40, 0.0 }
  0x17   : > { %v272_v17 = vadd.f32 %v271_v12, %v270_v14  ;;  %v240_v52 = vld [vmem:[%s620_s18 + $0x138] sm:$0xff]  ;;  %v287_v53 = vsel %vm265_vm2, %v212_v43, 0.0  ;;  %v214_v55 = vld [vmem:[%s620_s18 + $0x68] sm:$0xff]  ;;  %v346_v57 = vsel %vm265_vm2, %v239_v46, 0.0  ;;  %v241_v58 = vld [vmem:[%s620_s18 + $0x140] sm:$0xff]  ;;  %v289_v59 = vsel %vm265_vm2, %v213_v49, 0.0 }
  0x18   : > { %v339_v42 = vadd.f32 %v338_v33, %v337_v36  ;;  %v215_v61 = vld [vmem:[%s620_s18 + $0x70] sm:$0xff]  ;;  %v348_v63 = vsel %vm265_vm2, %v240_v52, 0.0  ;;  %v242_v0 = vld [vmem:[%s620_s18 + $0x148] sm:$0xff]  ;;  %v291_v1 = vsel %vm265_vm2, %v214_v55, 0.0  ;;  %v216_v3 = vld [vmem:[%s620_s18 + $0x78] sm:$0xff]  ;;  %v350_v5 = vsel %vm265_vm2, %v241_v58, 0.0 }
  0x19   : > { %v274_v20 = vadd.f32 %v273_v15, %v272_v17  ;;  %v243_v6 = vld [vmem:[%s620_s18 + $0x150] sm:$0xff]  ;;  %v293_v7 = vsel %vm265_vm2, %v215_v61, 0.0  ;;  %v217_v9 = vld [vmem:[%s620_s18 + $0x80] sm:$0xff]  ;;  %v352_v11 = vsel %vm265_vm2, %v242_v0, 0.0  ;;  %v244_v12 = vld [vmem:[%s620_s18 + $0x158] sm:$0xff]  ;;  %v295_v13 = vsel %vm265_vm2, %v216_v3, 0.0 }
  0x1a   : > { %v341_v48 = vadd.f32 %v340_v39, %v339_v42  ;;  %v218_v15 = vld [vmem:[%s620_s18 + $0x88] sm:$0xff]  ;;  %v354_v17 = vsel %vm265_vm2, %v243_v6, 0.0  ;;  %v297_v19 = vsel %vm265_vm2, %v217_v9, 0.0  ;;  %v221_v33 = vld [vmem:[%s620_s18 + $0xa0] sm:$0xff]  ;;  %v248_v36 = vld [vmem:[%s620_s18 + $0x178] sm:$0xff] }
  0x1b   : > { %v276_v23 = vadd.f32 %v275_v18, %v274_v20  ;;  %v245_v18 = vld [vmem:[%s620_s18 + $0x160] sm:$0xff]  ;;  %v246_v24 = vld [vmem:[%s620_s18 + $0x168] sm:$0xff]  ;;  %v299_v25 = vsel %vm265_vm2, %v218_v15, 0.0  ;;  %v305_v43 = vsel %vm265_vm2, %v221_v33, 0.0 }
  0x1c   : > { %v343_v54 = vadd.f32 %v342_v45, %v341_v48  ;;  %v358_v29 = vsel %vm265_vm2, %v245_v18, 0.0  ;;  %v222_v39 = vld [vmem:[%s620_s18 + $0xa8] sm:$0xff]  ;;  %v249_v42 = vld [vmem:[%s620_s18 + $0x180] sm:$0xff]  ;;  %v223_v45 = vld [vmem:[%s620_s18 + $0xb0] sm:$0xff] }
  0x1d   : > { %v278_v30 = vadd.f32 %v277_v21, %v276_v23  ;;  %v219_v21 = vld [vmem:[%s620_s18 + $0x90] sm:$0xff]  ;;  %v356_v23 = vsel %vm265_vm2, %v244_v12, 0.0  ;;  %v250_v48 = vld [vmem:[%s620_s18 + $0x188] sm:$0xff]  ;;  %v307_v49 = vsel %vm265_vm2, %v222_v39, 0.0  ;;  %v309_v55 = vsel %vm265_vm2, %v223_v45, 0.0 }
  0x1e   : > { %v345_v60 = vadd.f32 %v344_v51, %v343_v54  ;;  %v301_v31 = vsel %vm265_vm2, %v219_v21, 0.0  ;;  %v224_v51 = vld [vmem:[%s620_s18 + $0xb8] sm:$0xff]  ;;  %v251_v54 = vld [vmem:[%s620_s18 + $0x190] sm:$0xff] }
  0x1f   : > { %v280_v38 = vadd.f32 %v279_v27, %v278_v30  ;;  %v220_v27 = vld [vmem:[%s620_s18 + $0x98] sm:$0xff]  ;;  %v247_v30 = vld [vmem:[%s620_s18 + $0x170] sm:$0xff]  ;;  %v311_v61 = vsel %vm265_vm2, %v224_v51, 0.0 }
  0x20   : > { %v347_v2 = vadd.f32 %v346_v57, %v345_v60  ;;  %v303_v37 = vsel %vm265_vm2, %v220_v27, 0.0  ;;  %v225_v57 = vld [vmem:[%s620_s18 + $0xc0] sm:$0xff]  ;;  %v252_v60 = vld [vmem:[%s620_s18 + $0x198] sm:$0xff] }
  0x21   : > { %v282_v44 = vadd.f32 %v281_v35, %v280_v38  ;;  %v360_v35 = vsel %vm265_vm2, %v246_v24, 0.0  ;;  %v313_v3 = vsel %vm265_vm2, %v225_v57, 0.0 }
  0x22   : > { %v349_v8 = vadd.f32 %v348_v63, %v347_v2  ;;  %v226_v63 = vld [vmem:[%s620_s18 + $0xc8] sm:$0xff]  ;;  %v253_v2 = vld [vmem:[%s620_s18 + $0x1a0] sm:$0xff] }
  0x23   : > { %v284_v50 = vadd.f32 %v283_v41, %v282_v44  ;;  %v362_v41 = vsel %vm265_vm2, %v247_v30, 0.0  ;;  %v315_v9 = vsel %vm265_vm2, %v226_v63, 0.0 }
  0x24   : > { %v351_v14 = vadd.f32 %v350_v5, %v349_v8  ;;  %v227_v5 = vld [vmem:[%s620_s18 + $0xd0] sm:$0xff]  ;;  %v254_v8 = vld [vmem:[%s620_s18 + $0x1a8] sm:$0xff] }
  0x25   : > { %v286_v56 = vadd.f32 %v285_v47, %v284_v50  ;;  %v364_v47 = vsel %vm265_vm2, %v248_v36, 0.0  ;;  %v317_v15 = vsel %vm265_vm2, %v227_v5, 0.0 }
  0x26   : > { %v353_v20 = vadd.f32 %v352_v11, %v351_v14  ;;  %v228_v11 = vld [vmem:[%s620_s18 + $0xd8] sm:$0xff]  ;;  %v255_v14 = vld [vmem:[%s620_s18 + $0x1b0] sm:$0xff] }
  0x27   : > { %v288_v62 = vadd.f32 %v287_v53, %v286_v56  ;;  %v366_v53 = vsel %vm265_vm2, %v249_v42, 0.0  ;;  %v319_v21 = vsel %vm265_vm2, %v228_v11, 0.0 }
  0x28   : > { %v355_v26 = vadd.f32 %v354_v17, %v353_v20  ;;  %v229_v17 = vld [vmem:[%s620_s18 + $0xe0] sm:$0xff]  ;;  %v256_v20 = vld [vmem:[%s620_s18 + $0x1b8] sm:$0xff] }
  0x29   : > { %v290_v4 = vadd.f32 %v289_v59, %v288_v62  ;;  %v368_v59 = vsel %vm265_vm2, %v250_v48, 0.0  ;;  %v321_v27 = vsel %vm265_vm2, %v229_v17, 0.0  ;;  %v261_v48 = vld [vmem:[%s620_s18 + $0x1e0] sm:$0xff] }
  0x2a   : > { %v357_v32 = vadd.f32 %v356_v23, %v355_v26  ;;  %v230_v23 = vld [vmem:[%s620_s18 + $0xe8] sm:$0xff]  ;;  %v257_v26 = vld [vmem:[%s620_s18 + $0x1c0] sm:$0xff] }
  0x2b   : > { %v292_v10 = vadd.f32 %v291_v1, %v290_v4  ;;  %v370_v1 = vsel %vm265_vm2, %v251_v54, 0.0  ;;  %v323_v33 = vsel %vm265_vm2, %v230_v23, 0.0 }
  0x2c   : > { %v359_v38 = vadd.f32 %v358_v29, %v357_v32  ;;  %v231_v29 = vld [vmem:[%s620_s18 + $0xf0] sm:$0xff]  ;;  %v258_v32 = vld [vmem:[%s620_s18 + $0x1c8] sm:$0xff] }
  0x2d   : > { %v294_v16 = vadd.f32 %v293_v7, %v292_v10  ;;  %v372_v7 = vsel %vm265_vm2, %v252_v60, 0.0  ;;  %v325_v39 = vsel %vm265_vm2, %v231_v29, 0.0  ;;  %v384_v42 = vsel %vm265_vm2, %v258_v32, 0.0  ;;  %v264_v60 = vld [vmem:[%s620_s18 + $0x1f8] sm:$0xff] }
  0x2e   : > { %v361_v44 = vadd.f32 %v360_v35, %v359_v38  ;;  %v232_v35 = vld [vmem:[%s620_s18 + $0xf8] sm:$0xff]  ;;  %v259_v38 = vld [vmem:[%s620_s18 + $0x1d0] sm:$0xff] }
  0x2f   : > { %v296_v22 = vadd.f32 %v295_v13, %v294_v16  ;;  %v374_v13 = vsel %vm265_vm2, %v253_v2, 0.0 }
  0x30   : > { %v363_v50 = vadd.f32 %v362_v41, %v361_v44  ;;  %v327_v44 = vsel %vm265_vm2, %v232_v35, 0.0 }
  0x31   : > { %v298_v28 = vadd.f32 %v297_v19, %v296_v22  ;;  %v376_v19 = vsel %vm265_vm2, %v254_v8, 0.0 }
  0x32   : > { %v365_v56 = vadd.f32 %v364_v47, %v363_v50  ;;  %v386_v47 = vsel %vm265_vm2, %v259_v38, 0.0 }
  0x33   : > { %v300_v34 = vadd.f32 %v299_v25, %v298_v28  ;;  %v378_v25 = vsel %vm265_vm2, %v255_v14, 0.0 }
  0x34   : > { %v367_v62 = vadd.f32 %v366_v53, %v365_v56  ;;  %v263_v56 = vld [vmem:[%s620_s18 + $0x1f0] sm:$0xff] }
  0x35   : > { %v302_v40 = vadd.f32 %v301_v31, %v300_v34  ;;  %v380_v31 = vsel %vm265_vm2, %v256_v20, 0.0  ;;  %v394_v63 = vsel %vm265_vm2, %v263_v56, 0.0 }
  0x36   : > { %v369_v4 = vadd.f32 %v368_v59, %v367_v62 }
  0x37   : > { %v304_v46 = vadd.f32 %v303_v37, %v302_v40  ;;  %v382_v37 = vsel %vm265_vm2, %v257_v26, 0.0 }
  0x38   : > { %v371_v10 = vadd.f32 %v370_v1, %v369_v4  ;;  %v396_v1 = vsel %vm265_vm2, %v264_v60, 0.0 }
  0x39   : > { %v306_v52 = vadd.f32 %v305_v43, %v304_v46  ;;  %v260_v43 = vld [vmem:[%s620_s18 + $0x1d8] sm:$0xff] }
  0x3a   : > { %v373_v16 = vadd.f32 %v372_v7, %v371_v10  ;;  %v388_v51 = vsel %vm265_vm2, %v260_v43, 0.0 }
  0x3b   : > { %v308_v58 = vadd.f32 %v307_v49, %v306_v52  ;;  %v262_v52 = vld [vmem:[%s620_s18 + $0x1e8] sm:$0xff] }
  0x3c   : > { %v375_v22 = vadd.f32 %v374_v13, %v373_v16  ;;  %v392_v59 = vsel %vm265_vm2, %v262_v52, 0.0 }
  0x3d   : > { %v310_v0 = vadd.f32 %v309_v55, %v308_v58  ;;  %v390_v55 = vsel %vm265_vm2, %v261_v48, 0.0 }
  0x3e   : > { %v377_v28 = vadd.f32 %v376_v19, %v375_v22  ;;  %v552_v19 = vld [vmem:[%s195_s24] ss:$0 sm:$0xff] }
  0x3f   : > { %v312_v6 = vadd.f32 %v311_v61, %v310_v0 }
  0x40   : > { %v379_v34 = vadd.f32 %v378_v25, %v377_v28 }
  0x41   : > { %v314_v12 = vadd.f32 %v313_v3, %v312_v6 }
  0x42   : > { %v381_v40 = vadd.f32 %v380_v31, %v379_v34 }
  0x43   : > { %v316_v18 = vadd.f32 %v315_v9, %v314_v12 }
  0x44   : > { %v383_v45 = vadd.f32 %v382_v37, %v381_v40 }
  0x45   : > { %v318_v24 = vadd.f32 %v317_v15, %v316_v18 }
  0x46   : > { %v385_v49 = vadd.f32 %v384_v42, %v383_v45 }
  0x47   : > { %v320_v30 = vadd.f32 %v319_v21, %v318_v24 }
  0x48   : > { %v387_v53 = vadd.f32 %v386_v47, %v385_v49 }
  0x49   : > { %v322_v36 = vadd.f32 %v321_v27, %v320_v30 }
  0x4a   : > { %v389_v57 = vadd.f32 %v388_v51, %v387_v53 }
  0x4b   : > { %v324_v41 = vadd.f32 %v323_v33, %v322_v36 }
  0x4c   : > { %v391_v61 = vadd.f32 %v390_v55, %v389_v57 }
  0x4d   : > { %v326_v46 = vadd.f32 %v325_v39, %v324_v41 }
  0x4e   : > { %v393_v0 = vadd.f32 %v392_v59, %v391_v61 }
  0x4f   : > { %v328_v50 = vadd.f32 %v327_v44, %v326_v46 }
  0x50   : > { %v395_v3 = vadd.f32 %v394_v63, %v393_v0 }
  0x51   : > { %v329_v54 = vrot.slane %v328_v50, 4 }
  0x52   : > { %v397_v4 = vadd.f32 %v396_v1, %v395_v3 }
  0x53   : > { %v330_v58 = vadd.f32 %v329_v54, %v328_v50 }
  0x54   : > { %v398_v6 = vrot.slane %v397_v4, 4 }
  0x55   : > { %v331_v62 = vrot.slane %v330_v58, 2 }
  0x56   : > { %v399_v7 = vadd.f32 %v398_v6, %v397_v4 }
  0x57   : > { %v332_v2 = vadd.f32 %v331_v62, %v330_v58 }
  0x58   : > { %v400_v9 = vrot.slane %v399_v7, 2 }
  0x59   : > { %v333_v5 = vrot.slane %v332_v2, 1 }
  0x5a   : > { %v401_v10 = vadd.f32 %v400_v9, %v399_v7 }
  0x5b   : > { %v334_v8 = vadd.f32 %v333_v5, %v332_v2 }
  0x5c   : > { %v402_v11 = vrot.slane %v401_v10, 1 }
  0x5d   : > { %v404_v12 = vpack.c.bf16 %v334_v8, %v334_v8 }
  0x5e   : > { %v403_v13 = vadd.f32 %v402_v11, %v401_v10 }
  0x5f   : > { %v416_v15 = vunpack.c.l.b16 %v404_v12 }
  0x60   : > { %v405_v14 = vpack.c.bf16 %v403_v13, %v403_v13 }
  0x62   : > { %v417_v16 = vunpack.c.l.b16 %v405_v14 }
  0x64   : > { %v419_v17 = vsel %vm418_vm3, %v417_v16, %v416_v15 }
  0x65   : > { %v420_v18 = vpack.c.b16 %v419_v17, %v419_v17 }
  0x67   : > { %562 = vmatmul.mubr.msk.bf16.vlgmr.msra.gmra.mrb[0].mxu0 %vm265_vm2, %v420_v18 }
 0x13a   : > { %v462_v20 = vpop.f32.mrb[0].mxu0 }
 0x13b   : > { %v463_v21 = vadd.f32 %v552_v19, %v462_v20  ;;  %v563_v22 = vpop.f32.mrb[1].mxu0 }
 0x13c   : > { %v465_v23 = vpop.f32.mrb[2].mxu0 }
 0x13d   : > { %468 = vst [vmem:[%s199_s28] sm:$0x3] %v463_v21  ;;  %v564_v24 = vpop.f32.mrb[3].mxu0 }
 0x13e PF: > { %s13_s12 = sadd.s32 1, %s581_s12  }
 0x13f   : > { %p10_p4 = scmp.ge.s32.totalorder %s13_s12, 4  }
 0x141   :  { %12 = sbr.rel (!%p10_p4) target bundleno = 1 (0x1), region = 68 }

</bundles_post_ra>
